<compile_context>
chip_gen: v7x
topology: tpu7x:2x2x1
jax: 0.10.0
libtpu: 0.0.40
codegen_flags: <defaults>
</compile_context>

<pallas_src>
import functools

import jax
import jax.numpy as jnp
from jax.experimental import pallas as pl
from jax.experimental.pallas import tpu as pltpu

SPREAD = 0.01  # fixed hyper-parameter from __init__
_LANE = 128


def _cdiv(a, b):
    return -(-a // b)


def _round_up(a, b):
    return _cdiv(a, b) * b


def _vmem_limit_bytes():
    try:
        cap = int(pltpu.get_tpu_info().vmem_capacity_bytes)
    except Exception:
        cap = 64 * 1024 * 1024
    # Hard cap at 48 MiB: safe per-TensorCore even if the query returns a
    # chip-level number on a dual-TC / 64 MiB-per-TC part, with headroom for
    # Mosaic internal scratch.  Plenty for a bandwidth-bound streaming kernel.
    return min(cap * 3 // 4, 48 * 1024 * 1024)


def _tensorcores_per_chip():
    try:
        kind = jax.devices()[0].device_kind.lower()
        if "v7" in kind:
            return 2
    except Exception:
        pass
    return 1


# --------------------------------------------------------------------------
# Main path: the whole (row tile, full row) block is resident, so the per-row
# reduction is exact in one grid step.  Two-pass mean/variance reusing
# `centered` (needed downstream anyway).
# --------------------------------------------------------------------------
def _xsrelu_rowblock_kernel(p_ref, x_ref, o_ref, *, inv_n, inv_nm1):
    x = x_ref[...].astype(jnp.float32)
    mean = jnp.sum(x, axis=-1, keepdims=True) * inv_n
    centered = x - mean
    # Unbiased estimator (torch.std default): divide by n-1.
    var = jnp.sum(centered * centered, axis=-1, keepdims=True) * inv_nm1
    std = jnp.sqrt(var)

    # Grid-invariant scalars precomputed in the wrapper:
    #   p[0] = std_mult / (1 + spread)
    #   p[1] = std_mult * (1 + spread)
    #   p[2] = sigmoid(std_mult)
    c_low = p_ref[0]
    c_high = p_ref[1]
    sig = p_ref[2]

    r_low = jnp.maximum(centered - c_low * std, 0.0)
    r_high = jnp.maximum(centered - c_high * std, 0.0)
    o_ref[...] = (r_low + (r_high - r_low) * sig).astype(o_ref.dtype)


# --------------------------------------------------------------------------
# Fallback path (rows too long to keep a full row in VMEM): lane-tiled
# reduction kernel (accumulates s1 / s2 per row) + lane-tiled apply kernel.
# --------------------------------------------------------------------------
def _rowstat_kernel(x_ref, s1_ref, s2_ref, *, row_len, lane_tile):
    j = pl.program_id(1)

    @pl.when(j == 0)
    def _():
        s1_ref[...] = jnp.zeros_like(s1_ref)
        s2_ref[...] = jnp.zeros_like(s2_ref)

    x = x_ref[...].astype(jnp.float32)
    # Mask the ragged last lane tile (garbage lanes must not pollute the sums).
    col = jax.lax.broadcasted_iota(jnp.int32, x.shape, 1) + j * lane_tile
    x = jnp.where(col < row_len, x, 0.0)
    s1_ref[...] += jnp.sum(x, axis=-1, keepdims=True)
    s2_ref[...] += jnp.sum(x * x, axis=-1, keepdims=True)


def _xsrelu_apply_kernel(p_ref, x_ref, mean_ref, std_ref, o_ref):
    x = x_ref[...].astype(jnp.float32)
    thr_low = mean_ref[...] + p_ref[0] * std_ref[...]
    thr_high = mean_ref[...] + p_ref[1] * std_ref[...]
    sig = p_ref[2]
    r_low = jnp.maximum(x - thr_low, 0.0)
    r_high = jnp.maximum(x - thr_high, 0.0)
    o_ref[...] = (r_low + (r_high - r_low) * sig).astype(o_ref.dtype)


def xsrelu_cw_std_2(x, std_mult, *, spread=SPREAD,
                    target_tile_bytes=2 * 1024 * 1024):
    """Forward pass of XSReLU_cw_std_2.

    x: (N, C, *spatial) or (N, D) array.
    std_mult: shape (1,) learnable scalar parameter.
    """
    orig_shape = x.shape
    if x.ndim > 2:
        rows = orig_shape[0] * orig_shape[1]
        row_len = 1
        for d in orig_shape[2:]:
            row_len *= d
    else:
        # PyTorch path: view(N, 1, -1) -> reduction over the full row.
        rows = orig_shape[0]
        row_len = orig_shape[1]

    x2 = x.reshape(rows, row_len)
    itemsize = jnp.dtype(x.dtype).itemsize
    sublane = max(8, 32 // itemsize)          # 8 f32, 16 bf16, 32 int8
    vmem_limit = _vmem_limit_bytes()
    num_tc = _tensorcores_per_chip()

    # Grid-invariant scalars hoisted out of the kernel body (SMEM params).
    sm = std_mult.astype(jnp.float32).reshape(-1)[0]
    params = jnp.stack(
        [sm * (1.0 / (1.0 + spread)), sm * (1.0 + spread), jax.nn.sigmoid(sm)]
    ).astype(jnp.float32)

    # Conservative per-element VMEM footprint: double-buffered in + out tiles
    # plus ~8 live f32 temporaries.
    bytes_per_elem = 4 * itemsize + 8 * 4

    if row_len * sublane * bytes_per_elem <= vmem_limit:
        # ------------------------- main path -------------------------------
        tr_budget = max(
            sublane,
            (target_tile_bytes // max(1, row_len * itemsize)) // sublane * sublane)
        tr_vmem = max(
            sublane,
            (vmem_limit // (row_len * bytes_per_elem)) // sublane * sublane)
        tr_max = min(tr_budget, tr_vmem)

        # Balanced tiling: padding waste bounded by < sublane rows.
        n_steps = _cdiv(rows, tr_max)
        if num_tc > 1:
            # Dual-TC parts: aim for >= 2 pipelined steps per TensorCore when
            # there is enough work; no forced split on single-TC parts.
            n_steps = max(n_steps, min(2 * num_tc, max(1, rows // sublane)))
        tr = _round_up(_cdiv(rows, n_steps), sublane)
        if tr >= rows:
            tr = rows                      # full-dim block (always legal)
        grid0 = _cdiv(rows, tr)            # ragged last block: OOB writes dropped

        inv_n = 1.0 / row_len
        # row_len == 1 -> NaN, matching torch's unbiased std.
        inv_nm1 = 1.0 / (row_len - 1) if row_len > 1 else float("nan")

        kernel = functools.partial(_xsrelu_rowblock_kernel,
                                   inv_n=inv_n, inv_nm1=inv_nm1)
        out = pl.pallas_call(
            kernel,
            grid=(grid0,),
            in_specs=[
                pl.BlockSpec(memory_space=pltpu.MemorySpace.SMEM),
                pl.BlockSpec((tr, row_len), lambda i: (i, 0)),
            ],
            out_specs=pl.BlockSpec((tr, row_len), lambda i: (i, 0)),
            out_shape=jax.ShapeDtypeStruct((rows, row_len), x.dtype),
            compiler_params=pltpu.CompilerParams(
                dimension_semantics=("parallel",),
                vmem_limit_bytes=vmem_limit,
            ),
            cost_estimate=pl.CostEstimate(
                flops=9 * rows * row_len,
                transcendentals=rows,
                bytes_accessed=2 * rows * row_len * itemsize,
            ),
        )(params, x2)
        return out.reshape(orig_shape)

    # --------------------- fallback: lane-tiled two-phase -------------------
    tr = rows if rows <= sublane else sublane
    lane_budget = max(
        _LANE, (target_tile_bytes // max(1, tr * itemsize)) // _LANE * _LANE)
    lane_cap = max(
        _LANE, (vmem_limit // (tr * bytes_per_elem)) // _LANE * _LANE)
    lane_budget = min(lane_budget, lane_cap)
    n_lane = _cdiv(row_len, lane_budget)
    lane_tile = _round_up(_cdiv(row_len, n_lane), _LANE)
    grid_r = _cdiv(rows, tr)
    grid_l = _cdiv(row_len, lane_tile)

    stat_shape = jax.ShapeDtypeStruct((rows, 1), jnp.float32)
    s1, s2 = pl.pallas_call(
        functools.partial(_rowstat_kernel, row_len=row_len, lane_tile=lane_tile),
        grid=(grid_r, grid_l),
        in_specs=[pl.BlockSpec((tr, lane_tile), lambda i, j: (i, j))],
        out_specs=(pl.BlockSpec((tr, 1), lambda i, j: (i, 0)),
                   pl.BlockSpec((tr, 1), lambda i, j: (i, 0))),
        out_shape=(stat_shape, stat_shape),
        compiler_params=pltpu.CompilerParams(
            dimension_semantics=("parallel", "arbitrary"),
            vmem_limit_bytes=vmem_limit,
        ),
    )(x2)

    # Finalize per-row mean / unbiased std on tiny (rows, 1) arrays.
    mean = s1 * (1.0 / row_len)
    var = jnp.maximum(s2 - s1 * mean, 0.0) * (1.0 / (row_len - 1))
    std = jnp.sqrt(var)

    out = pl.pallas_call(
        _xsrelu_apply_kernel,
        grid=(grid_r, grid_l),
        in_specs=[
            pl.BlockSpec(memory_space=pltpu.MemorySpace.SMEM),
            pl.BlockSpec((tr, lane_tile), lambda i, j: (i, j)),
            pl.BlockSpec((tr, 1), lambda i, j: (i, 0)),
            pl.BlockSpec((tr, 1), lambda i, j: (i, 0)),
        ],
        out_specs=pl.BlockSpec((tr, lane_tile), lambda i, j: (i, j)),
        out_shape=jax.ShapeDtypeStruct((rows, row_len), x.dtype),
        compiler_params=pltpu.CompilerParams(
            dimension_semantics=("parallel", "parallel"),
            vmem_limit_bytes=vmem_limit,
        ),
    )(params, x2, mean, std)
    return out.reshape(orig_shape)


def _reference(x, std_mult, spread=SPREAD):
    """Pure-JAX reference mirroring the PyTorch forward."""
    orig_shape = x.shape
    if x.ndim > 2:
        xv = x.reshape(orig_shape[0], orig_shape[1], -1)
    else:
        xv = x.reshape(orig_shape[0], 1, -1)
    mean = jnp.mean(xv, axis=-1, keepdims=True)
    std = jnp.std(xv, axis=-1, keepdims=True, ddof=1)
    sm = std_mult[0]
    r_low = jax.nn.relu(xv - mean - (1.0 / (1.0 + spread)) * sm * std)
    r_high = jax.nn.relu(xv - mean - (1.0 + spread) * sm * std)
    res = r_low + (r_high - r_low) * jax.nn.sigmoid(sm)
    return res.reshape(orig_shape)


if __name__ == "__main__":
    key = jax.random.PRNGKey(0)
    std_mult = jnp.array([0.8], dtype=jnp.float32)  # deterministic param init

    # 1) Main case: NCHW, H*W a multiple of 128 (lane-dense stores).
    x = jax.random.normal(key, (2, 4, 16, 16), dtype=jnp.float32)
    out = jax.block_until_ready(xsrelu_cw_std_2(x, std_mult))
    ref = _reference(x, std_mult)
    assert out.shape == x.shape and out.dtype == x.dtype
    assert jnp.allclose(out, ref, atol=1e-5, rtol=1e-5), "mismatch (16x16)"

    # 2) Small ragged case: rows (6) and H*W (49) non-multiples; full-dim block.
    x2 = jax.random.normal(jax.random.PRNGKey(1), (2, 3, 7, 7), dtype=jnp.float32)
    out2 = jax.block_until_ready(xsrelu_cw_std_2(x2, std_mult))
    ref2 = _reference(x2, std_mult)
    assert out2.shape == x2.shape and out2.dtype == x2.dtype
    assert jnp.allclose(out2, ref2, atol=1e-5, rtol=1e-5), "mismatch (7x7)"

    # 3) 2-D (N, D) path.
    x3 = jax.random.normal(jax.random.PRNGKey(2), (4, 200), dtype=jnp.float32)
    out3 = jax.block_until_ready(xsrelu_cw_std_2(x3, std_mult))
    ref3 = _reference(x3, std_mult)
    assert out3.shape == x3.shape and out3.dtype == x3.dtype
    assert jnp.allclose(out3, ref3, atol=1e-5, rtol=1e-5), "mismatch (2-D)"

    # 4) Multi-step grid with a ragged last row block (tiny tile override).
    x4 = jax.random.normal(jax.random.PRNGKey(3), (2, 10, 16, 16), dtype=jnp.float32)
    out4 = jax.block_until_ready(
        xsrelu_cw_std_2(x4, std_mult, target_tile_bytes=8 * 1024))
    ref4 = _reference(x4, std_mult)
    assert out4.shape == x4.shape and out4.dtype == x4.dtype
    assert jnp.allclose(out4, ref4, atol=1e-5, rtol=1e-5), "mismatch (ragged rows)"

    # 5) Long-row fallback path: lane-tiled two-phase (ragged rows and lanes).
    x5 = jax.random.normal(jax.random.PRNGKey(4), (9, 200003), dtype=jnp.float32)
    out5 = jax.block_until_ready(xsrelu_cw_std_2(x5, std_mult))
    ref5 = _reference(x5, std_mult)
    assert out5.shape == x5.shape and out5.dtype == x5.dtype
    assert jnp.allclose(out5, ref5, atol=1e-4, rtol=1e-4), "mismatch (long rows)"

    print("KERNEL_OK")
</pallas_src>

<mosaic_0001>
module attributes {stable_mosaic.version = 11 : i64} {
  func.func @_xsrelu_rowblock_kernel(%arg0: i32, %arg1: memref<3xf32, #tpu.memory_space<smem>>, %arg2: memref<8x256xf32, #tpu.memory_space<vmem>>, %arg3: memref<8x256xf32, #tpu.memory_space<vmem>>) attributes {dimension_semantics = [#tpu.dimension_semantics<parallel>], iteration_bounds = array<i64: 1>, scalar_prefetch = 0 : i64, scratch_operands = 0 : i64, tpu.core_type = #tpu.core_type<tc>, window_params = [{transform_indices = @transform_0, window_bounds = array<i64: 3>}, {transform_indices = @transform_1, window_bounds = array<i64: 8, 256>}, {transform_indices = @transform_2, window_bounds = array<i64: 8, 256>}]} {
    %c0 = arith.constant 0 : index
    %c0_0 = arith.constant 0 : index
    %0 = vector.load %arg2[%c0, %c0_0] : memref<8x256xf32, #tpu.memory_space<vmem>>, vector<8x256xf32>
    %cst = arith.constant dense<0.000000e+00> : vector<8xf32>
    %1 = vector.multi_reduction <add>, %0, %cst [1] : vector<8x256xf32> to vector<8xf32>
    %2 = vector.shape_cast %1 : vector<8xf32> to vector<8x1xf32>
    %cst_1 = arith.constant 3.906250e-03 : f32
    %3 = vector.broadcast %cst_1 : f32 to vector<8x1xf32>
    %4 = arith.mulf %2, %3 : vector<8x1xf32>
    %5 = vector.broadcast %4 : vector<8x1xf32> to vector<8x256xf32>
    %6 = arith.subf %0, %5 : vector<8x256xf32>
    %7 = arith.mulf %6, %6 : vector<8x256xf32>
    %cst_2 = arith.constant dense<0.000000e+00> : vector<8xf32>
    %8 = vector.multi_reduction <add>, %7, %cst_2 [1] : vector<8x256xf32> to vector<8xf32>
    %9 = vector.shape_cast %8 : vector<8xf32> to vector<8x1xf32>
    %cst_3 = arith.constant 0.00392156886 : f32
    %10 = vector.broadcast %cst_3 : f32 to vector<8x1xf32>
    %11 = arith.mulf %9, %10 : vector<8x1xf32>
    %12 = math.sqrt %11 : vector<8x1xf32>
    %c0_4 = arith.constant 0 : index
    %13 = memref.load %arg1[%c0_4] : memref<3xf32, #tpu.memory_space<smem>>
    %c1 = arith.constant 1 : index
    %14 = memref.load %arg1[%c1] : memref<3xf32, #tpu.memory_space<smem>>
    %c2 = arith.constant 2 : index
    %15 = memref.load %arg1[%c2] : memref<3xf32, #tpu.memory_space<smem>>
    %16 = vector.broadcast %13 : f32 to vector<8x1xf32>
    %17 = arith.mulf %16, %12 : vector<8x1xf32>
    %18 = vector.broadcast %17 : vector<8x1xf32> to vector<8x256xf32>
    %19 = arith.subf %6, %18 : vector<8x256xf32>
    %cst_5 = arith.constant 0.000000e+00 : f32
    %20 = vector.broadcast %cst_5 : f32 to vector<8x256xf32>
    %21 = arith.maximumf %19, %20 : vector<8x256xf32>
    %22 = vector.broadcast %14 : f32 to vector<8x1xf32>
    %23 = arith.mulf %22, %12 : vector<8x1xf32>
    %24 = vector.broadcast %23 : vector<8x1xf32> to vector<8x256xf32>
    %25 = arith.subf %6, %24 : vector<8x256xf32>
    %cst_6 = arith.constant 0.000000e+00 : f32
    %26 = vector.broadcast %cst_6 : f32 to vector<8x256xf32>
    %27 = arith.maximumf %25, %26 : vector<8x256xf32>
    %28 = arith.subf %27, %21 : vector<8x256xf32>
    %29 = vector.broadcast %15 : f32 to vector<8x256xf32>
    %30 = arith.mulf %28, %29 : vector<8x256xf32>
    %31 = arith.addf %21, %30 : vector<8x256xf32>
    %c0_7 = arith.constant 0 : index
    %c0_8 = arith.constant 0 : index
    %32 = vector.load %arg3[%c0_7, %c0_8] : memref<8x256xf32, #tpu.memory_space<vmem>>, vector<8x256xf32>
    tpu.vector_store %arg3[%c0_7, %c0_8], %31 {strides = array<i32>} : memref<8x256xf32, #tpu.memory_space<vmem>>, vector<8x256xf32>,
    return
  }
  func.func @transform_0(%arg0: i32) -> i32 {
    %c0_i32 = arith.constant 0 : i32
    %c0_i32_0 = arith.constant 0 : i32
    return %c0_i32 : i32
  }
  func.func @transform_1(%arg0: i32) -> (i32, i32) {
    %c0_i32 = arith.constant 0 : i32
    %c0_i32_0 = arith.constant 0 : i32
    return %arg0, %c0_i32 : i32, i32
  }
  func.func @transform_2(%arg0: i32) -> (i32, i32) {
    %c0_i32 = arith.constant 0 : i32
    %c0_i32_0 = arith.constant 0 : i32
    return %arg0, %c0_i32 : i32, i32
  }
}

</mosaic_0001>

<bundles_post_ra>
// kernel: tpu_custom_call.1
= control target key start
LH: loop header
LB: loop body
LE: loop exit
PB: predicated region body
PF: predicated region fallthrough
CT: control target
= control target key end

     0   :  { %7 = vsyncpa [#allocation5], 0  ;;  %s217_s0 = inlined_call_operand.hbm [shape: f32[3], index: 0, kind: input, shape index: {}]   ;;  %s218_s1 = inlined_call_operand.hbm [shape: f32[8,256], index: 1, kind: input, shape index: {}]   ;;  %s219_s2 = inlined_call_operand.hbm [shape: f32[8,256], index: 2, kind: output, shape index: {}]  }
   0x1   :  { %8 = vsyncpa [#allocation3], 0 }
   0x2   :  { %9 = vsyncpa [#allocation4], 0  ;;  %s103_s11 = scalar_lea.hbm %s217_s0, 16 }
   0x3   :  { %p104_p0 = scmp.ne.s32.totalorder %s217_s0, %s103_s11  ;;  %p107_p1 = scmp.lt.u32.totalorder %s103_s11, %s217_s0 }
   0x5   :  { %p109_p2 = pnand %p107_p1, %p104_p0 }
   0x7   :  { %112 = shalt.err (!%p109_p2)
}
   0x8   :  { %s163_s16 = smov [#allocation2]   ;;  %s164_s19 = smov [#allocation6]  }
   0x9   :  { %17 = dma.hbm_to_smem %s217_s0, 16, %s163_s16, [#allocation5]  }
   0xa   :  { %s24_s20 = sshll.u32 %s164_s19, 4  ;;  %s113_s23 = scalar_lea.hbm %s218_s1, 256  ;;  %s25_s20 = int_to_ptr.vmem [resolvable:$true] %s24_s20 }
   0xb   :  { %p114_p3 = scmp.ne.s32.totalorder %s218_s1, %s113_s23  ;;  %p117_p4 = scmp.lt.u32.totalorder %s113_s23, %s218_s1 }
   0xd   :  { %p119_p5 = pnand %p117_p4, %p114_p3 }
   0xf   :  { %122 = shalt.err (!%p119_p5)
}
  0x10   :  { %s123_s28 = scalar_lea.vmem %s25_s20, 256  ;;  %p128_p7 = scmp.lt.s32.totalorder %s25_s20, %s25_s20 }
  0x11   :  { %p124_p6 = scmp.ne.s32.totalorder %s25_s20, %s123_s28  ;;  %p129_p8 = scmp.lt.s32.totalorder %s123_s28, %s123_s28 }
  0x13   :  { %p130_p9 = por %p129_p8, %p128_p7 }
  0x15   :  { %p131_p10 = pnand %p130_p9, %p124_p6 }
  0x17   :  { %134 = shalt.err (!%p131_p10)
}
  0x18   :  { %27 = dma.hbm_to_vmem [thread:$0]  %s218_s1, 256, %s25_s20, [#allocation3]  }
  0x19   :  { %157 = dma.done.wait [#allocation5], 16  }
  0x1a   :  { %158 = vsyncadd [#allocation5], 4294967280 }
  0x1b   :  { %159 = dma.done.wait [#allocation3], 256  }
  0x1c   :  { %160 = vsyncadd [#allocation3], 4294967040 }
  0x1d   :  { %34 = sfence }
  0x1e   :  { %v35_v0 = vld [vmem:[#allocation6] sm:$0xff]  ;;  %v36_v1 = vld [vmem:[#allocation6 + $0x8] sm:$0xff]  ;;  %s56_s1 = sld [smem:[#allocation2]]  ;;  %s96_s30 = sld [smem:[#allocation2 + $0x1]] }
  0x1f   :  { %v37_v2 = vadd.f32 %v36_v1, %v35_v0  ;;  %s97_s3 = sld [smem:[#allocation2 + $0x2]]  ;;  %s165_s4 = smov [#allocation7]  }
  0x20   :  { %s86_s5 = sshll.u32 %s165_s4, 4  ;;  %s87_s5 = int_to_ptr.vmem [resolvable:$true] %s86_s5 }
  0x21   :  { %38 = vadd.xlane.f32.xlu0 %v37_v2  ;;  %s135_s6 = scalar_lea.vmem %s87_s5, 256  ;;  %p140_p12 = scmp.lt.s32.totalorder %s87_s5, %s87_s5 }
  0x22   :  { %p136_p11 = scmp.ne.s32.totalorder %s87_s5, %s135_s6  ;;  %p141_p13 = scmp.lt.s32.totalorder %s135_s6, %s135_s6 }
  0x24   :  { %v59_v15 = vstv %s56_s1  ;;  %v65_v16 = vstv %s96_s30  ;;  %p142_p0 = por %p141_p13, %p140_p12 }
  0x25   :  { %v73_v29 = vstv %s97_s3 }
  0x26   :  { %p143_p1 = pnand %p142_p0, %p136_p11 }
  0xae   :  { %v39_v3 = vpop.xlane.xlu0 %38 }
  0xaf   :  { %v40_v4 = vmul.f32 0.00390625, %v39_v3 }
  0xb1   :  { %v41_v5 = vsub.f32 %v35_v0, %v40_v4  ;;  %v42_v6 = vsub.f32 %v36_v1, %v40_v4 }
  0xb3   :  { %v43_v7 = vmul.f32 %v41_v5, %v41_v5  ;;  %v44_v8 = vmul.f32 %v42_v6, %v42_v6 }
  0xb5   :  { %v45_v9 = vadd.f32 %v44_v8, %v43_v7 }
  0xb7   :  { %46 = vadd.xlane.f32.xlu0 %v45_v9 }
 0x144   :  { %v47_v10 = vpop.xlane.xlu0 %46 }
 0x145   :  { %v48_v11 = vmul.f32 0.003921569, %v47_v10 }
 0x147   :  { %101 = vrsqrt.f32 %v48_v11  ;;  %vm51_vm0 = vcmp.eq.f32.partialorder %v48_v11, inf  ;;  %v54_v14 = vand.u32 2147483648, %v48_v11  ;;  %vm53_vm1 = vcmp.eq.f32.partialorder %v48_v11, 0.0 }
 0x151   :  { %v102_v12 = vpop.eup %101 }
 0x152   :  { %v50_v13 = vmul.f32 %v102_v12, %v48_v11 }
 0x154   :  { %v52_v17 = vsel %vm51_vm0, %v48_v11, %v50_v13 }
 0x155   :  { %v55_v18 = vsel %vm53_vm1, %v54_v14, %v52_v17 }
 0x156   :  { %v60_v19 = vmul.f32 %v59_v15, %v55_v18  ;;  %v66_v20 = vmul.f32 %v65_v16, %v55_v18 }
 0x158   :  { %v61_v21 = vsub.f32 %v41_v5, %v60_v19  ;;  %v62_v22 = vsub.f32 %v42_v6, %v60_v19  ;;  %v67_v23 = vsub.f32 %v41_v5, %v66_v20  ;;  %v68_v24 = vsub.f32 %v42_v6, %v66_v20 }
 0x15a   :  { %v63_v25 = vmax.f32 %v61_v21, 0.0  ;;  %v64_v26 = vmax.f32 %v62_v22, 0.0  ;;  %v69_v27 = vmax.f32 %v67_v23, 0.0  ;;  %v70_v28 = vmax.f32 %v68_v24, 0.0 }
 0x15c   :  { %v71_v30 = vsub.f32 %v69_v27, %v63_v25  ;;  %v72_v31 = vsub.f32 %v70_v28, %v64_v26 }
 0x15e   :  { %v74_v32 = vmul.f32 %v73_v29, %v71_v30  ;;  %v75_v33 = vmul.f32 %v73_v29, %v72_v31 }
 0x160   :  { %v76_v34 = vadd.f32 %v74_v32, %v63_v25  ;;  %v77_v35 = vadd.f32 %v75_v33, %v64_v26 }
 0x162   :  { %78 = vst [vmem:[#allocation7] sm:$0xff] %v76_v34  ;;  %79 = vst [vmem:[#allocation7 + $0x8] sm:$0xff] %v77_v35 }
 0x163   :  { %146 = shalt.err (!%p143_p1)
}
 0x164   :  { %s147_s9 = scalar_lea.hbm %s219_s2, 256 }
 0x165   :  { %p148_p2 = scmp.ne.s32.totalorder %s219_s2, %s147_s9  ;;  %p151_p3 = scmp.lt.u32.totalorder %s147_s9, %s219_s2 }
 0x167   :  { %p153_p4 = pnand %p151_p3, %p148_p2 }
 0x169   :  { %156 = shalt.err (!%p153_p4)
}
 0x16a   :  { %89 = dma.vmem_to_hbm [thread:$0]  %s87_s5, 256, %s219_s2, [#allocation4]  }
 0x16b   :  { %161 = dma.done.wait [#allocation4], 256  }
 0x16c   :  { %162 = vsyncadd [#allocation4], 4294967040 }
 0x16d   :  { %93 = vsyncpa [#allocation3], 1 }
 0x16e   :  { %94 = vsyncpa [#allocation4], 1 }
 0x16f   :  { %95 = vsyncpa [#allocation5], 1 }

</bundles_post_ra>
